<compile_context>
chip_gen: v7x
topology: tpu7x:2x2x1
jax: 0.10.0
libtpu: 0.0.40
codegen_flags: <defaults>
</compile_context>

<pallas_src>
import functools
import numpy as np
import jax
import jax.numpy as jnp
from jax.experimental import pallas as pl
from jax.experimental.pallas import tpu as pltpu  # noqa: F401  (kept for TPU backend import)

# ---- model hyper-params (small, consistent with the module) -----------------
D_MODEL = 32
NHEAD = 4
HEAD_DIM = D_MODEL // NHEAD
DIM_FF = 64
B = 2
S = 8
LN_EPS = 1e-5
_SCALE = 1.0 / np.sqrt(3.0 * HEAD_DIM)


# ----------------------------- fused Pallas kernel ----------------------------
def _encoder_kernel(xp_ref, rel_ref, par_ref, out_ref,
                    *, batch, seq, d_model, nhead, head_dim, dim_ff):
    d = d_model
    dcat = (nhead + 1) * d
    two_hd = 2 * head_dim
    koff = nhead * two_hd          # start of the packed-k column block (= 2D)
    voff = 2 * koff                # start of the v column block (= 4D)

    # ---- parameter slab slices (hoisted once) --------------------------------
    r0 = 2 * d                     # Wproj rows 0:2D
    r1 = r0 + dcat                 # W1 rows
    r2 = r1 + dim_ff               # W2 rows
    w_proj = par_ref[0:r0, :]                  # (2D, 5D)
    w1 = par_ref[r0:r1, 0:dim_ff]              # (5D, FF)
    w2 = par_ref[r1:r2, 0:d]                   # (FF, D)
    g1 = par_ref[r2 + 0:r2 + 1, :]             # (1, 5D)
    be1 = par_ref[r2 + 1:r2 + 2, :]            # (1, 5D)
    b1 = par_ref[r2 + 2:r2 + 3, 0:dim_ff]      # (1, FF)
    b2 = par_ref[r2 + 3:r2 + 4, 0:d]           # (1, D)
    g2 = par_ref[r2 + 4:r2 + 5, 0:d]           # (1, D)
    be2 = par_ref[r2 + 5:r2 + 6, 0:d]          # (1, D)

    # ---- packed projection: one MXU op for q|pq, (k+pk)|k, v ------------------
    xp = xp_ref[...]                                                   # (B*S, 2D)
    proj = jnp.dot(xp, w_proj, preferred_element_type=jnp.float32)     # (B*S, 5D)

    # ---- per-(b,h) block-diagonal logits (A@B^T via dot_general, no .T) -------
    dn = (((1,), (1,)), ((), ()))
    logit_blocks = []
    for b in range(batch):                      # static unroll (B, NHEAD small)
        rows = slice(b * seq, (b + 1) * seq)
        for h in range(nhead):
            qc = proj[rows, h * two_hd:(h + 1) * two_hd]               # (S, 2HD) pre-scaled
            kc = proj[rows, koff + h * two_hd:koff + (h + 1) * two_hd] # (S, 2HD)
            logit_blocks.append(
                jax.lax.dot_general(qc, kc, dn,
                                    preferred_element_type=jnp.float32))  # (S, S)
    logits = jnp.concatenate(logit_blocks, axis=0) + rel_ref[...]      # (B*NH*S, S)

    # ---- ONE batched softmax over the whole slab ------------------------------
    m = jnp.max(logits, axis=-1, keepdims=True)
    e = jnp.exp(logits - m)
    a = e * pl.reciprocal(jnp.sum(e, axis=-1, keepdims=True), approx=True)

    # ---- batched A@V per batch, then heads: sublanes -> lanes ------------------
    hs = nhead * seq
    attn_rows = []
    for b in range(batch):
        ab = a[b * hs:(b + 1) * hs, :]                                 # (NH*S, S)
        vb = proj[b * seq:(b + 1) * seq, voff:voff + d]                # (S, D)
        rb = jnp.dot(ab, vb, preferred_element_type=jnp.float32)       # (NH*S, D)
        attn_rows.append(
            jnp.concatenate([rb[h * seq:(h + 1) * seq, :] for h in range(nhead)],
                            axis=1))                                   # (S, NH*D)
    attn = jnp.concatenate(attn_rows, axis=0)                          # (B*S, NH*D)

    # cat([src, attn], -1) as a value (no scratch, no masked partial stores)
    xcat = jnp.concatenate([xp[:, 0:d], attn], axis=1)                 # (B*S, (NH+1)*D)

    # ---- LayerNorm1 (biased variance, eps=1e-5, like nn.LayerNorm) -------------
    mu = jnp.mean(xcat, axis=-1, keepdims=True)
    var = jnp.mean((xcat - mu) ** 2, axis=-1, keepdims=True)
    xn = (xcat - mu) * jax.lax.rsqrt(var + LN_EPS) * g1 + be1

    # ---- Feed-forward: Linear1 + ReLU + Linear2 --------------------------------
    h1 = jnp.maximum(jnp.dot(xn, w1, preferred_element_type=jnp.float32) + b1, 0.0)
    y = jnp.dot(h1, w2, preferred_element_type=jnp.float32) + b2

    # ---- LayerNorm2 ------------------------------------------------------------
    mu2 = jnp.mean(y, axis=-1, keepdims=True)
    var2 = jnp.mean((y - mu2) ** 2, axis=-1, keepdims=True)
    out_ref[...] = (y - mu2) * jax.lax.rsqrt(var2 + LN_EPS) * g2 + be2


# ------------------------------ wrapper ---------------------------------------
def pack_params(params):
    """Pack the 13 small operands into ONE lane-dense parameter slab (done once).

    Slab layout (rows x 160 lanes):
      [0   : 2D    )  Wproj: columns = per-head [q_h|pq_h] (scaled), per-head
                      [(k+pk)_h|k_h], then v   -> applied to xp = [src | pos]
      [2D  : 2D+5D )  W1  (5D, FF)  zero-padded to 160 lanes
      [... : +FF   )  W2  (FF, D)   zero-padded to 160 lanes
      [... : +6    )  g1, be1, bias1, bias2, g2, be2 (each padded to 160 lanes)
    """
    (wq, wk, wpq, wpk, wv, g1, be1, w1, bias1, w2, bias2, g2, be2) = params
    d = D_MODEL
    hd = HEAD_DIM
    dcat = (NHEAD + 1) * d
    scale = jnp.float32(_SCALE)

    zcol = jnp.zeros((d, hd), jnp.float32)
    cols = []
    for h in range(NHEAD):                        # q-side: [q_h | pq_h], scale folded in
        sl = slice(h * hd, (h + 1) * hd)
        cols.append(jnp.concatenate([wq[:, sl] * scale, zcol], axis=0))
        cols.append(jnp.concatenate([zcol, wpq[:, sl] * scale], axis=0))
    for h in range(NHEAD):                        # k-side: [(k+pk)_h | k_h]
        sl = slice(h * hd, (h + 1) * hd)
        cols.append(jnp.concatenate([wk[:, sl], wpk[:, sl]], axis=0))
        cols.append(jnp.concatenate([wk[:, sl], jnp.zeros_like(wpk[:, sl])], axis=0))
    cols.append(jnp.concatenate([wv, jnp.zeros_like(wv)], axis=0))      # v block
    w_proj = jnp.concatenate(cols, axis=1)                              # (2D, 5D)

    def pad_cols(mat):
        mat = jnp.asarray(mat, jnp.float32)
        return jnp.pad(mat, ((0, 0), (0, dcat - mat.shape[1])))

    def row(vv):
        vv = jnp.asarray(vv, jnp.float32).reshape(-1)
        return jnp.pad(vv, (0, dcat - vv.shape[0]))

    vec_pack = jnp.stack([row(g1), row(be1), row(bias1),
                          row(bias2), row(g2), row(be2)], axis=0)       # (6, 5D)

    slab = jnp.concatenate([w_proj, pad_cols(w1), pad_cols(w2), vec_pack], axis=0)
    return slab                                                         # (2D+5D+FF+6, 5D)


def encoder_layer_pallas(src, pos, rel_pos, param_slab):
    Bn, Sn, Dn = src.shape
    BS = Bn * Sn

    # Activations: xp = [src | pos] flattened to (B*S, 2D); rel as a lane-dense 2D slab.
    xp = jnp.concatenate([src.reshape(BS, Dn), pos.reshape(BS, Dn)], axis=-1)
    rel2 = rel_pos.reshape(Bn * NHEAD * Sn, Sn)

    kernel = functools.partial(
        _encoder_kernel, batch=Bn, seq=Sn, d_model=Dn,
        nhead=NHEAD, head_dim=Dn // NHEAD, dim_ff=DIM_FF)

    out2 = pl.pallas_call(
        kernel,
        out_shape=jax.ShapeDtypeStruct((BS, Dn), jnp.float32),
        grid=(1,),                                      # single step: whole problem in VMEM
        in_specs=[
            pl.BlockSpec((BS, 2 * Dn), lambda i: (0, 0)),                 # xp = [src | pos]
            pl.BlockSpec((Bn * NHEAD * Sn, Sn), lambda i: (0, 0)),        # rel_pos slab
            pl.BlockSpec(param_slab.shape, lambda i: (0, 0)),             # packed params
        ],
        out_specs=pl.BlockSpec((BS, Dn), lambda i: (0, 0)),
    )(xp, rel2, param_slab)
    return out2.reshape(Bn, Sn, Dn)


# --------------------------- pure-JAX reference --------------------------------
def encoder_layer_ref(src, pos, rel_pos, params):
    (wq, wk, wpq, wpk, wv,
     g1, be1, w1, bias1, w2, bias2, g2, be2) = params
    q, k = src @ wq, src @ wk
    pq, pk = pos @ wpq, pos @ wpk
    v = src @ wv
    outs = []
    for h in range(NHEAD):
        sl = slice(h * HEAD_DIM, (h + 1) * HEAD_DIM)
        logits = (jnp.einsum('bqd,bkd->bqk', q[..., sl], k[..., sl])
                  + jnp.einsum('bqd,bkd->bqk', q[..., sl], pk[..., sl])
                  + jnp.einsum('bqd,bkd->bqk', pq[..., sl], k[..., sl]))
        logits = logits * _SCALE + rel_pos[:, h]
        a = jax.nn.softmax(logits, axis=-1)
        outs.append(jnp.einsum('bqk,bkd->bqd', a, v))
    attn = jnp.concatenate(outs, axis=-1)

    def ln(x, g, b):
        mu = x.mean(-1, keepdims=True)
        var = ((x - mu) ** 2).mean(-1, keepdims=True)
        return (x - mu) / jnp.sqrt(var + LN_EPS) * g + b

    x = ln(jnp.concatenate([src, attn], -1), g1[0], be1[0])
    h = jnp.maximum(x @ w1 + bias1[0], 0.0)
    y = h @ w2 + bias2[0]
    return ln(y, g2[0], be2[0])


# ------------------------------- main -------------------------------------------
def _make_params(key):
    ks = jax.random.split(key, 8)
    std = 0.05
    wq = jax.random.normal(ks[0], (D_MODEL, D_MODEL), jnp.float32) * std
    wk = jax.random.normal(ks[1], (D_MODEL, D_MODEL), jnp.float32) * std
    wpq = jax.random.normal(ks[2], (D_MODEL, D_MODEL), jnp.float32) * std
    wpk = jax.random.normal(ks[3], (D_MODEL, D_MODEL), jnp.float32) * std
    wv = jax.random.normal(ks[4], (D_MODEL, D_MODEL), jnp.float32) * std
    dcat = (NHEAD + 1) * D_MODEL
    g1 = jnp.ones((1, dcat), jnp.float32)
    be1 = jnp.zeros((1, dcat), jnp.float32)
    w1 = jax.random.normal(ks[5], (dcat, DIM_FF), jnp.float32) * std
    bias1 = jax.random.normal(ks[6], (1, DIM_FF), jnp.float32) * std
    w2 = jax.random.normal(ks[7], (DIM_FF, D_MODEL), jnp.float32) * std
    bias2 = jnp.zeros((1, D_MODEL), jnp.float32)
    g2 = jnp.ones((1, D_MODEL), jnp.float32)
    be2 = jnp.zeros((1, D_MODEL), jnp.float32)
    return (wq, wk, wpq, wpk, wv, g1, be1, w1, bias1, w2, bias2, g2, be2)


if __name__ == "__main__":
    key = jax.random.PRNGKey(0)
    k_src, k_pos, k_rel, k_par = jax.random.split(key, 4)
    src = jax.random.normal(k_src, (B, S, D_MODEL), jnp.float32)
    pos_encoding = jax.random.normal(k_pos, (B, S, D_MODEL), jnp.float32)
    rel_pos = jax.random.normal(k_rel, (B, NHEAD, S, S), jnp.float32) * 0.1
    params = _make_params(k_par)
    param_slab = pack_params(params)

    fn = jax.jit(encoder_layer_pallas)
    out = jax.block_until_ready(fn(src, pos_encoding, rel_pos, param_slab))

    ref = encoder_layer_ref(src, pos_encoding, rel_pos, params)
    assert out.shape == (B, S, D_MODEL)
    assert np.allclose(np.asarray(out), np.asarray(ref), atol=2e-3, rtol=2e-3)
    print("KERNEL_OK")
</pallas_src>

<mosaic_0001>
module attributes {stable_mosaic.version = 11 : i64} {
  func.func @_encoder_kernel(%arg0: i32, %arg1: memref<16x64xf32, #tpu.memory_space<vmem>>, %arg2: memref<64x8xf32, #tpu.memory_space<vmem>>, %arg3: memref<294x160xf32, #tpu.memory_space<vmem>>, %arg4: memref<16x32xf32, #tpu.memory_space<vmem>>) attributes {dimension_semantics = [#tpu.dimension_semantics<arbitrary>], iteration_bounds = array<i64: 1>, scalar_prefetch = 0 : i64, scratch_operands = 0 : i64, tpu.core_type = #tpu.core_type<tc>, window_params = [{pipeline_mode = #tpu.pipeline_mode<synchronous>, transform_indices = @transform_0, window_bounds = array<i64: 16, 64>}, {pipeline_mode = #tpu.pipeline_mode<synchronous>, transform_indices = @transform_1, window_bounds = array<i64: 64, 8>}, {pipeline_mode = #tpu.pipeline_mode<synchronous>, transform_indices = @transform_2, window_bounds = array<i64: 294, 160>}, {pipeline_mode = #tpu.pipeline_mode<synchronous>, transform_indices = @transform_3, window_bounds = array<i64: 16, 32>}]} {
    %c0 = arith.constant 0 : index
    %c0_0 = arith.constant 0 : index
    %0 = vector.load %arg3[%c0, %c0_0] : memref<294x160xf32, #tpu.memory_space<vmem>>, vector<64x160xf32>
    %c64 = arith.constant 64 : index
    %c0_1 = arith.constant 0 : index
    %1 = vector.load %arg3[%c64, %c0_1] : memref<294x160xf32, #tpu.memory_space<vmem>>, vector<160x64xf32>
    %c224 = arith.constant 224 : index
    %c0_2 = arith.constant 0 : index
    %2 = vector.load %arg3[%c224, %c0_2] : memref<294x160xf32, #tpu.memory_space<vmem>>, vector<64x32xf32>
    %c288 = arith.constant 288 : index
    %c0_3 = arith.constant 0 : index
    %3 = vector.load %arg3[%c288, %c0_3] : memref<294x160xf32, #tpu.memory_space<vmem>>, vector<1x160xf32>
    %c289 = arith.constant 289 : index
    %c0_4 = arith.constant 0 : index
    %4 = vector.load %arg3[%c289, %c0_4] : memref<294x160xf32, #tpu.memory_space<vmem>>, vector<1x160xf32>
    %c290 = arith.constant 290 : index
    %c0_5 = arith.constant 0 : index
    %5 = vector.load %arg3[%c290, %c0_5] : memref<294x160xf32, #tpu.memory_space<vmem>>, vector<1x64xf32>
    %c291 = arith.constant 291 : index
    %c0_6 = arith.constant 0 : index
    %6 = vector.load %arg3[%c291, %c0_6] : memref<294x160xf32, #tpu.memory_space<vmem>>, vector<1x32xf32>
    %c292 = arith.constant 292 : index
    %c0_7 = arith.constant 0 : index
    %7 = vector.load %arg3[%c292, %c0_7] : memref<294x160xf32, #tpu.memory_space<vmem>>, vector<1x32xf32>
    %c293 = arith.constant 293 : index
    %c0_8 = arith.constant 0 : index
    %8 = vector.load %arg3[%c293, %c0_8] : memref<294x160xf32, #tpu.memory_space<vmem>>, vector<1x32xf32>
    %c0_9 = arith.constant 0 : index
    %c0_10 = arith.constant 0 : index
    %9 = vector.load %arg1[%c0_9, %c0_10] : memref<16x64xf32, #tpu.memory_space<vmem>>, vector<16x64xf32>
    %cst = arith.constant dense<0.000000e+00> : vector<16x160xf32>
    %10 = tpu.matmul %9, %0, %cst {dimension_numbers = #tpu.dot_dimension_numbers<[1], [0], [0], [1], [0, 0, 1, 1], [], []>} : vector<16x64xf32>, vector<64x160xf32>, vector<16x160xf32> -> vector<16x160xf32>
    %11 = vector.extract_strided_slice %10 {offsets = [0, 0], sizes = [8, 16], strides = [1, 1]} : vector<16x160xf32> to vector<8x16xf32>
    %12 = vector.extract_strided_slice %10 {offsets = [0, 64], sizes = [8, 16], strides = [1, 1]} : vector<16x160xf32> to vector<8x16xf32>
    %cst_11 = arith.constant dense<0.000000e+00> : vector<8x8xf32>
    %13 = tpu.matmul %11, %12, %cst_11 {dimension_numbers = #tpu.dot_dimension_numbers<[1], [1], [0], [0], [0, 0, 1, 0], [], []>} : vector<8x16xf32>, vector<8x16xf32>, vector<8x8xf32> -> vector<8x8xf32>
    %14 = vector.extract_strided_slice %10 {offsets = [0, 16], sizes = [8, 16], strides = [1, 1]} : vector<16x160xf32> to vector<8x16xf32>
    %15 = vector.extract_strided_slice %10 {offsets = [0, 80], sizes = [8, 16], strides = [1, 1]} : vector<16x160xf32> to vector<8x16xf32>
    %cst_12 = arith.constant dense<0.000000e+00> : vector<8x8xf32>
    %16 = tpu.matmul %14, %15, %cst_12 {dimension_numbers = #tpu.dot_dimension_numbers<[1], [1], [0], [0], [0, 0, 1, 0], [], []>} : vector<8x16xf32>, vector<8x16xf32>, vector<8x8xf32> -> vector<8x8xf32>
    %17 = vector.extract_strided_slice %10 {offsets = [0, 32], sizes = [8, 16], strides = [1, 1]} : vector<16x160xf32> to vector<8x16xf32>
    %18 = vector.extract_strided_slice %10 {offsets = [0, 96], sizes = [8, 16], strides = [1, 1]} : vector<16x160xf32> to vector<8x16xf32>
    %cst_13 = arith.constant dense<0.000000e+00> : vector<8x8xf32>
    %19 = tpu.matmul %17, %18, %cst_13 {dimension_numbers = #tpu.dot_dimension_numbers<[1], [1], [0], [0], [0, 0, 1, 0], [], []>} : vector<8x16xf32>, vector<8x16xf32>, vector<8x8xf32> -> vector<8x8xf32>
    %20 = vector.extract_strided_slice %10 {offsets = [0, 48], sizes = [8, 16], strides = [1, 1]} : vector<16x160xf32> to vector<8x16xf32>
    %21 = vector.extract_strided_slice %10 {offsets = [0, 112], sizes = [8, 16], strides = [1, 1]} : vector<16x160xf32> to vector<8x16xf32>
    %cst_14 = arith.constant dense<0.000000e+00> : vector<8x8xf32>
    %22 = tpu.matmul %20, %21, %cst_14 {dimension_numbers = #tpu.dot_dimension_numbers<[1], [1], [0], [0], [0, 0, 1, 0], [], []>} : vector<8x16xf32>, vector<8x16xf32>, vector<8x8xf32> -> vector<8x8xf32>
    %23 = vector.extract_strided_slice %10 {offsets = [8, 0], sizes = [8, 16], strides = [1, 1]} : vector<16x160xf32> to vector<8x16xf32>
    %24 = vector.extract_strided_slice %10 {offsets = [8, 64], sizes = [8, 16], strides = [1, 1]} : vector<16x160xf32> to vector<8x16xf32>
    %cst_15 = arith.constant dense<0.000000e+00> : vector<8x8xf32>
    %25 = tpu.matmul %23, %24, %cst_15 {dimension_numbers = #tpu.dot_dimension_numbers<[1], [1], [0], [0], [0, 0, 1, 0], [], []>} : vector<8x16xf32>, vector<8x16xf32>, vector<8x8xf32> -> vector<8x8xf32>
    %26 = vector.extract_strided_slice %10 {offsets = [8, 16], sizes = [8, 16], strides = [1, 1]} : vector<16x160xf32> to vector<8x16xf32>
    %27 = vector.extract_strided_slice %10 {offsets = [8, 80], sizes = [8, 16], strides = [1, 1]} : vector<16x160xf32> to vector<8x16xf32>
    %cst_16 = arith.constant dense<0.000000e+00> : vector<8x8xf32>
    %28 = tpu.matmul %26, %27, %cst_16 {dimension_numbers = #tpu.dot_dimension_numbers<[1], [1], [0], [0], [0, 0, 1, 0], [], []>} : vector<8x16xf32>, vector<8x16xf32>, vector<8x8xf32> -> vector<8x8xf32>
    %29 = vector.extract_strided_slice %10 {offsets = [8, 32], sizes = [8, 16], strides = [1, 1]} : vector<16x160xf32> to vector<8x16xf32>
    %30 = vector.extract_strided_slice %10 {offsets = [8, 96], sizes = [8, 16], strides = [1, 1]} : vector<16x160xf32> to vector<8x16xf32>
    %cst_17 = arith.constant dense<0.000000e+00> : vector<8x8xf32>
    %31 = tpu.matmul %29, %30, %cst_17 {dimension_numbers = #tpu.dot_dimension_numbers<[1], [1], [0], [0], [0, 0, 1, 0], [], []>} : vector<8x16xf32>, vector<8x16xf32>, vector<8x8xf32> -> vector<8x8xf32>
    %32 = vector.extract_strided_slice %10 {offsets = [8, 48], sizes = [8, 16], strides = [1, 1]} : vector<16x160xf32> to vector<8x16xf32>
    %33 = vector.extract_strided_slice %10 {offsets = [8, 112], sizes = [8, 16], strides = [1, 1]} : vector<16x160xf32> to vector<8x16xf32>
    %cst_18 = arith.constant dense<0.000000e+00> : vector<8x8xf32>
    %34 = tpu.matmul %32, %33, %cst_18 {dimension_numbers = #tpu.dot_dimension_numbers<[1], [1], [0], [0], [0, 0, 1, 0], [], []>} : vector<8x16xf32>, vector<8x16xf32>, vector<8x8xf32> -> vector<8x8xf32>
    %35 = tpu.concatenate %13, %16, %19, %22, %25, %28, %31, %34 in 0 : vector<8x8xf32>, vector<8x8xf32>, vector<8x8xf32>, vector<8x8xf32>, vector<8x8xf32>, vector<8x8xf32>, vector<8x8xf32>, vector<8x8xf32> -> vector<64x8xf32>
    %c0_19 = arith.constant 0 : index
    %c0_20 = arith.constant 0 : index
    %36 = vector.load %arg2[%c0_19, %c0_20] : memref<64x8xf32, #tpu.memory_space<vmem>>, vector<64x8xf32>
    %37 = arith.addf %35, %36 : vector<64x8xf32>
    %cst_21 = arith.constant dense<0xFF800000> : vector<64xf32>
    %38 = vector.multi_reduction <maximumf>, %37, %cst_21 [1] : vector<64x8xf32> to vector<64xf32>
    %39 = vector.shape_cast %38 : vector<64xf32> to vector<64x1xf32>
    %40 = vector.broadcast %39 : vector<64x1xf32> to vector<64x8xf32>
    %41 = arith.subf %37, %40 : vector<64x8xf32>
    %42 = math.exp %41 : vector<64x8xf32>
    %cst_22 = arith.constant dense<0.000000e+00> : vector<64xf32>
    %43 = vector.multi_reduction <add>, %42, %cst_22 [1] : vector<64x8xf32> to vector<64xf32>
    %44 = vector.shape_cast %43 : vector<64xf32> to vector<64x1xf32>
    %45 = tpu.reciprocal %44 {approx = true} : vector<64x1xf32> -> vector<64x1xf32>
    %46 = vector.broadcast %45 : vector<64x1xf32> to vector<64x8xf32>
    %47 = arith.mulf %42, %46 : vector<64x8xf32>
    %48 = vector.extract_strided_slice %47 {offsets = [0, 0], sizes = [32, 8], strides = [1, 1]} : vector<64x8xf32> to vector<32x8xf32>
    %49 = vector.extract_strided_slice %10 {offsets = [0, 128], sizes = [8, 32], strides = [1, 1]} : vector<16x160xf32> to vector<8x32xf32>
    %cst_23 = arith.constant dense<0.000000e+00> : vector<32x32xf32>
    %50 = tpu.matmul %48, %49, %cst_23 {dimension_numbers = #tpu.dot_dimension_numbers<[1], [0], [0], [1], [0, 0, 1, 1], [], []>} : vector<32x8xf32>, vector<8x32xf32>, vector<32x32xf32> -> vector<32x32xf32>
    %51 = vector.extract_strided_slice %50 {offsets = [0, 0], sizes = [8, 32], strides = [1, 1]} : vector<32x32xf32> to vector<8x32xf32>
    %52 = vector.extract_strided_slice %50 {offsets = [8, 0], sizes = [8, 32], strides = [1, 1]} : vector<32x32xf32> to vector<8x32xf32>
    %53 = vector.extract_strided_slice %50 {offsets = [16, 0], sizes = [8, 32], strides = [1, 1]} : vector<32x32xf32> to vector<8x32xf32>
    %54 = vector.extract_strided_slice %50 {offsets = [24, 0], sizes = [8, 32], strides = [1, 1]} : vector<32x32xf32> to vector<8x32xf32>
    %55 = tpu.concatenate %51, %52, %53, %54 in 1 : vector<8x32xf32>, vector<8x32xf32>, vector<8x32xf32>, vector<8x32xf32> -> vector<8x128xf32>
    %56 = vector.extract_strided_slice %47 {offsets = [32, 0], sizes = [32, 8], strides = [1, 1]} : vector<64x8xf32> to vector<32x8xf32>
    %57 = vector.extract_strided_slice %10 {offsets = [8, 128], sizes = [8, 32], strides = [1, 1]} : vector<16x160xf32> to vector<8x32xf32>
    %cst_24 = arith.constant dense<0.000000e+00> : vector<32x32xf32>
    %58 = tpu.matmul %56, %57, %cst_24 {dimension_numbers = #tpu.dot_dimension_numbers<[1], [0], [0], [1], [0, 0, 1, 1], [], []>} : vector<32x8xf32>, vector<8x32xf32>, vector<32x32xf32> -> vector<32x32xf32>
    %59 = vector.extract_strided_slice %58 {offsets = [0, 0], sizes = [8, 32], strides = [1, 1]} : vector<32x32xf32> to vector<8x32xf32>
    %60 = vector.extract_strided_slice %58 {offsets = [8, 0], sizes = [8, 32], strides = [1, 1]} : vector<32x32xf32> to vector<8x32xf32>
    %61 = vector.extract_strided_slice %58 {offsets = [16, 0], sizes = [8, 32], strides = [1, 1]} : vector<32x32xf32> to vector<8x32xf32>
    %62 = vector.extract_strided_slice %58 {offsets = [24, 0], sizes = [8, 32], strides = [1, 1]} : vector<32x32xf32> to vector<8x32xf32>
    %63 = tpu.concatenate %59, %60, %61, %62 in 1 : vector<8x32xf32>, vector<8x32xf32>, vector<8x32xf32>, vector<8x32xf32> -> vector<8x128xf32>
    %64 = tpu.concatenate %55, %63 in 0 : vector<8x128xf32>, vector<8x128xf32> -> vector<16x128xf32>
    %65 = vector.extract_strided_slice %9 {offsets = [0, 0], sizes = [16, 32], strides = [1, 1]} : vector<16x64xf32> to vector<16x32xf32>
    %66 = tpu.concatenate %65, %64 in 1 : vector<16x32xf32>, vector<16x128xf32> -> vector<16x160xf32>
    %cst_25 = arith.constant dense<0.000000e+00> : vector<16xf32>
    %67 = vector.multi_reduction <add>, %66, %cst_25 [1] : vector<16x160xf32> to vector<16xf32>
    %68 = vector.shape_cast %67 : vector<16xf32> to vector<16x1xf32>
    %cst_26 = arith.constant 1.600000e+02 : f32
    %69 = vector.broadcast %cst_26 : f32 to vector<16x1xf32>
    %70 = arith.divf %68, %69 : vector<16x1xf32>
    %71 = vector.broadcast %70 : vector<16x1xf32> to vector<16x160xf32>
    %72 = arith.subf %66, %71 : vector<16x160xf32>
    %73 = arith.mulf %72, %72 : vector<16x160xf32>
    %cst_27 = arith.constant dense<0.000000e+00> : vector<16xf32>
    %74 = vector.multi_reduction <add>, %73, %cst_27 [1] : vector<16x160xf32> to vector<16xf32>
    %75 = vector.shape_cast %74 : vector<16xf32> to vector<16x1xf32>
    %cst_28 = arith.constant 1.600000e+02 : f32
    %76 = vector.broadcast %cst_28 : f32 to vector<16x1xf32>
    %77 = arith.divf %75, %76 : vector<16x1xf32>
    %78 = vector.broadcast %70 : vector<16x1xf32> to vector<16x160xf32>
    %79 = arith.subf %66, %78 : vector<16x160xf32>
    %cst_29 = arith.constant 9.99999974E-6 : f32
    %80 = vector.broadcast %cst_29 : f32 to vector<16x1xf32>
    %81 = arith.addf %77, %80 : vector<16x1xf32>
    %82 = math.rsqrt %81 : vector<16x1xf32>
    %83 = vector.broadcast %82 : vector<16x1xf32> to vector<16x160xf32>
    %84 = arith.mulf %79, %83 : vector<16x160xf32>
    %85 = vector.broadcast %3 : vector<1x160xf32> to vector<16x160xf32>
    %86 = arith.mulf %84, %85 : vector<16x160xf32>
    %87 = vector.broadcast %4 : vector<1x160xf32> to vector<16x160xf32>
    %88 = arith.addf %86, %87 : vector<16x160xf32>
    %cst_30 = arith.constant dense<0.000000e+00> : vector<16x64xf32>
    %89 = tpu.matmul %88, %1, %cst_30 {dimension_numbers = #tpu.dot_dimension_numbers<[1], [0], [0], [1], [0, 0, 1, 1], [], []>} : vector<16x160xf32>, vector<160x64xf32>, vector<16x64xf32> -> vector<16x64xf32>
    %90 = vector.broadcast %5 : vector<1x64xf32> to vector<16x64xf32>
    %91 = arith.addf %89, %90 : vector<16x64xf32>
    %cst_31 = arith.constant 0.000000e+00 : f32
    %92 = vector.broadcast %cst_31 : f32 to vector<16x64xf32>
    %93 = arith.maximumf %91, %92 : vector<16x64xf32>
    %cst_32 = arith.constant dense<0.000000e+00> : vector<16x32xf32>
    %94 = tpu.matmul %93, %2, %cst_32 {dimension_numbers = #tpu.dot_dimension_numbers<[1], [0], [0], [1], [0, 0, 1, 1], [], []>} : vector<16x64xf32>, vector<64x32xf32>, vector<16x32xf32> -> vector<16x32xf32>
    %95 = vector.broadcast %6 : vector<1x32xf32> to vector<16x32xf32>
    %96 = arith.addf %94, %95 : vector<16x32xf32>
    %cst_33 = arith.constant dense<0.000000e+00> : vector<16xf32>
    %97 = vector.multi_reduction <add>, %96, %cst_33 [1] : vector<16x32xf32> to vector<16xf32>
    %98 = vector.shape_cast %97 : vector<16xf32> to vector<16x1xf32>
    %cst_34 = arith.constant 3.200000e+01 : f32
    %99 = vector.broadcast %cst_34 : f32 to vector<16x1xf32>
    %100 = arith.divf %98, %99 : vector<16x1xf32>
    %101 = vector.broadcast %100 : vector<16x1xf32> to vector<16x32xf32>
    %102 = arith.subf %96, %101 : vector<16x32xf32>
    %103 = arith.mulf %102, %102 : vector<16x32xf32>
    %cst_35 = arith.constant dense<0.000000e+00> : vector<16xf32>
    %104 = vector.multi_reduction <add>, %103, %cst_35 [1] : vector<16x32xf32> to vector<16xf32>
    %105 = vector.shape_cast %104 : vector<16xf32> to vector<16x1xf32>
    %cst_36 = arith.constant 3.200000e+01 : f32
    %106 = vector.broadcast %cst_36 : f32 to vector<16x1xf32>
    %107 = arith.divf %105, %106 : vector<16x1xf32>
    %108 = vector.broadcast %100 : vector<16x1xf32> to vector<16x32xf32>
    %109 = arith.subf %96, %108 : vector<16x32xf32>
    %cst_37 = arith.constant 9.99999974E-6 : f32
    %110 = vector.broadcast %cst_37 : f32 to vector<16x1xf32>
    %111 = arith.addf %107, %110 : vector<16x1xf32>
    %112 = math.rsqrt %111 : vector<16x1xf32>
    %113 = vector.broadcast %112 : vector<16x1xf32> to vector<16x32xf32>
    %114 = arith.mulf %109, %113 : vector<16x32xf32>
    %115 = vector.broadcast %7 : vector<1x32xf32> to vector<16x32xf32>
    %116 = arith.mulf %114, %115 : vector<16x32xf32>
    %117 = vector.broadcast %8 : vector<1x32xf32> to vector<16x32xf32>
    %118 = arith.addf %116, %117 : vector<16x32xf32>
    %c0_38 = arith.constant 0 : index
    %c0_39 = arith.constant 0 : index
    %119 = vector.load %arg4[%c0_38, %c0_39] : memref<16x32xf32, #tpu.memory_space<vmem>>, vector<16x32xf32>
    tpu.vector_store %arg4[%c0_38, %c0_39], %118 {strides = array<i32>} : memref<16x32xf32, #tpu.memory_space<vmem>>, vector<16x32xf32>,
    return
  }
  func.func @transform_0(%arg0: i32) -> (i32, i32) {
    %c0_i32 = arith.constant 0 : i32
    %c0_i32_0 = arith.constant 0 : i32
    %c0_i32_1 = arith.constant 0 : i32
    return %c0_i32, %c0_i32_0 : i32, i32
  }
  func.func @transform_1(%arg0: i32) -> (i32, i32) {
    %c0_i32 = arith.constant 0 : i32
    %c0_i32_0 = arith.constant 0 : i32
    %c0_i32_1 = arith.constant 0 : i32
    return %c0_i32, %c0_i32_0 : i32, i32
  }
  func.func @transform_2(%arg0: i32) -> (i32, i32) {
    %c0_i32 = arith.constant 0 : i32
    %c0_i32_0 = arith.constant 0 : i32
    %c0_i32_1 = arith.constant 0 : i32
    return %c0_i32, %c0_i32_0 : i32, i32
  }
  func.func @transform_3(%arg0: i32) -> (i32, i32) {
    %c0_i32 = arith.constant 0 : i32
    %c0_i32_0 = arith.constant 0 : i32
    %c0_i32_1 = arith.constant 0 : i32
    return %c0_i32, %c0_i32_0 : i32, i32
  }
}

</mosaic_0001>

<bundles_post_ra>
// kernel: encoder_layer_pallas.1
= control target key start
LH: loop header
LB: loop body
LE: loop exit
PB: predicated region body
PF: predicated region fallthrough
CT: control target
= control target key end

     0   :  { %v1679_v7 = vmov 0.0   ;;  %s2038_s0 = inlined_call_operand.vmem [shape: f32[16,64], index: 0, kind: input, shape index: {}]   ;;  %s2039_s1 = inlined_call_operand.vmem [shape: f32[64,8], index: 1, kind: input, shape index: {}]   ;;  %s2040_s2 = inlined_call_operand.vmem [shape: f32[294,160], index: 2, kind: input, shape index: {}]   ;;  %s2041_s3 = inlined_call_operand.hbm [shape: f32[16,32], index: 3, kind: output, shape index: {}]  }
   0x1   :  { %v16_v0 = vld [vmem:[%s2040_s2 + $0x8] sm:$0xff]  ;;  %v18_v1 = vld [vmem:[%s2040_s2 + $0x18] sm:$0xff]  ;;  %v15_v2 = vld [vmem:[%s2040_s2] sm:$0xff]  ;;  %140 = vmatprep.mubr.f32.mxu0 %v1679_v7  ;;  %1480 = vmatprep.subr.mxu1 %v1679_v7 }
   0x2   :  { %v1540_v3 = vpack.c.bf16 %v18_v1, %v16_v0  ;;  %v17_v4 = vld [vmem:[%s2040_s2 + $0x10] sm:$0xff]  ;;  %v20_v5 = vld [vmem:[%s2040_s2 + $0x28] sm:$0xff]  ;;  %v22_v6 = vld [vmem:[%s2040_s2 + $0x38] sm:$0xff] }
   0x3   :  { %v1542_v8 = vpack.c.bf16 %v17_v4, %v15_v2  ;;  %v1544_v9 = vpack.c.bf16 %v22_v6, %v20_v5  ;;  %v19_v10 = vld [vmem:[%s2040_s2 + $0x20] sm:$0xff]  ;;  %v21_v11 = vld [vmem:[%s2040_s2 + $0x30] sm:$0xff]  ;;  %v24_v12 = vld [vmem:[%s2040_s2 + $0x48] sm:$0xff] }
   0x4   :  { %1541 = vmatprep.subr.bf16.mxu0 %v1540_v3  ;;  %v26_v13 = vld [vmem:[%s2040_s2 + $0x58] sm:$0xff]  ;;  %v1546_v14 = vpack.c.bf16 %v21_v11, %v19_v10  ;;  %v23_v16 = vld [vmem:[%s2040_s2 + $0x40] sm:$0xff]  ;;  %v25_v17 = vld [vmem:[%s2040_s2 + $0x50] sm:$0xff] }
   0x5   :  { %1543 = vmatpush1.bf16.msra.mxu0 %v1542_v8  ;;  %v1548_v15 = vpack.c.bf16 %v26_v13, %v24_v12  ;;  %v28_v18 = vld [vmem:[%s2040_s2 + $0x68] sm:$0xff]  ;;  %v30_v19 = vld [vmem:[%s2040_s2 + $0x78] sm:$0xff] }
   0x6   :  { %1545 = vmatprep.subr.bf16.mxu0 %v1544_v9 }
   0x7   :  { %8 = vsyncpa [#allocation3], 0  ;;  %v1550_v20 = vpack.c.bf16 %v25_v17, %v23_v16  ;;  %v1552_v21 = vpack.c.bf16 %v30_v19, %v28_v18  ;;  %v27_v22 = vld [vmem:[%s2040_s2 + $0x60] sm:$0xff]  ;;  %v29_v23 = vld [vmem:[%s2040_s2 + $0x70] sm:$0xff]  ;;  %vm69_vm0 = vcmask 523264   ;;  %vm1680_vm1 = vmmov 0  }
   0x8   :  { %v1554_v24 = vpack.c.bf16 %v29_v23, %v27_v22  ;;  %v1765_v25 = vld [vmem:[%s2038_s0] sm:$0xff]  ;;  %v1774_v26 = vld [vmem:[%s2038_s0 + $0x8] sm:$0xff]  ;;  %1482 = vmatprep.mubr.msk.f32.mxu1 %vm1680_vm1, %v1679_v7  ;;  %s1681_s21 = smov 112   ;;  %s1682_s22 = smov 64   ;;  %vm156_vm2 = vcmask 130048   ;;  %vm792_vm3 = vcmask 64512  }
   0x9   :  { %1547 = vmatpush1.bf16.msra.mxu0 %v1546_v14  ;;  %s1683_s0 = smov 16   ;;  %s1684_s23 = smov 48   ;;  %v776_v45 = vld [vmem:[%s2039_s1] sm:$0xff]  ;;  %v777_v49 = vld [vmem:[%s2039_s1 + $0x8] sm:$0xff]  ;;  %v779_v52 = vld [vmem:[%s2039_s1 + $0x18] sm:$0xff]  ;;  %vm990_vm4 = vcmask 261120  }
   0xa   :  { %1549 = vmatprep.subr.bf16.mxu0 %v1548_v15  ;;  %s1685_s24 = smov 80   ;;  %s1686_s25 = smov 32   ;;  %v780_v61 = vld [vmem:[%s2039_s1 + $0x20] sm:$0xff]  ;;  %v778_v63 = vld [vmem:[%s2039_s1 + $0x10] sm:$0xff]  ;;  %v781_v6 = vld [vmem:[%s2039_s1 + $0x28] sm:$0xff]  ;;  %vm993_vm5 = vcmask 785408  }
   0xb   :  { %s1687_s26 = smov 96   ;;  %v782_v10 = vld [vmem:[%s2039_s1 + $0x30] sm:$0xff]  ;;  %v783_v11 = vld [vmem:[%s2039_s1 + $0x38] sm:$0xff] }
   0xd   :  { %1551 = vmatpush1.bf16.msra.mxu0 %v1550_v20 }
   0xe   :  { %1553 = vmatprep.subr.bf16.mxu0 %v1552_v21 }
  0x11   :  { %1555 = vmatpush1.bf16.msra.mxu0 %v1554_v24 }
  0x12   :  { %1465 = vmatprep.subr.mxu0 %v1679_v7 }
  0x14   :  { %1399 = vmatmul.mubr.msk.f32.vlgmr.msra.gmra.mrb[0].mxu0 %vm69_vm0, %v1765_v25 }
  0x15   :  { %146 = vmatprep.mubr.f32.mxu0 %v1679_v7 }
  0x18   :  { %1400 = vmatmul.mubr.msk.f32.gmra.mrb[2].mxu0 %vm69_vm0, %v1774_v26 }
  0x19   :  { %1467 = vmatprep.mubr.msk.f32.mxu0 %vm1680_vm1, %v1679_v7 }
  0xe7   :  { %v142_v27 = vpop.f32.mrb[0].mxu0 }
  0xe8   :  { %231 = vrot.lane.b32.xlu1 %v142_v27, %s1681_s21  ;;  %154 = vrot.lane.b32.xlu0 %v142_v27, %s1682_s22  ;;  %v1783_v28 = vpop.f32.mrb[1].mxu0 }
  0xeb   :  { %v148_v29 = vpop.f32.mrb[2].mxu0 }
  0xec   :  { %389 = vrot.lane.b32.xlu1 %v142_v27, %s1683_s0  ;;  %233 = vrot.lane.b32.xlu0 %v142_v27, %s1684_s23  ;;  %v150_v30 = vpop.f32.mrb[3].mxu0 }
  0xf0   :  { %387 = vrot.lane.b32.xlu1 %v142_v27, %s1685_s24  ;;  %311 = vrot.lane.b32.xlu0 %v142_v27, %s1686_s25 }
  0xf4   :  { %309 = vrot.lane.b32.xlu0 %v142_v27, %s1687_s26  ;;  %466 = vrot.lane.b32.xlu1 %v148_v29, %s1682_s22 }
  0xf8   :  { %544 = vrot.lane.b32.xlu0 %v148_v29, %s1684_s23  ;;  %542 = vrot.lane.b32.xlu1 %v148_v29, %s1681_s21 }
  0xfc   :  { %622 = vrot.lane.b32.xlu0 %v148_v29, %s1686_s25  ;;  %700 = vrot.lane.b32.xlu1 %v148_v29, %s1683_s0 }
 0x100   :  { %620 = vrot.lane.b32.xlu0 %v148_v29, %s1687_s26  ;;  %698 = vrot.lane.b32.xlu1 %v148_v29, %s1685_s24  ;;  %s1689_s24 = smov [#allocation2]  }
 0x15a   :  { %v232_v31 = vpop.permute.xlu1 %231  ;;  %v155_v32 = vpop.permute.xlu0 %154 }
 0x15b   :  { %1466 = vmatpush3.xpose.msk.msra.mxu0 %vm156_vm2, %v155_v32 }
 0x15c   :  { %1470 = vmatprep.subr.mxu0 %v1679_v7 }
 0x15e   :  { %v390_v33 = vpop.permute.xlu1 %389  ;;  %1468 = vmatmul.mubr.msk.f32.vlgmr.msra.gmra.mrb[4].mxu0 %vm156_vm2, %v142_v27  ;;  %v234_v34 = vpop.permute.xlu0 %233 }
 0x15f   :  { %1471 = vmatpush3.xpose.msk.msra.mxu0 %vm156_vm2, %v234_v34  ;;  %1481 = vmatpush3.xpose.msk.msra.mxu1 %vm156_vm2, %v390_v33 }
 0x160   :  { %1472 = vmatprep.mubr.msk.f32.mxu0 %vm1680_vm1, %v1679_v7  ;;  %1475 = vmatprep.subr.mxu0 %v1679_v7 }
 0x161   :  { %1485 = vmatprep.subr.mxu1 %v1679_v7 }
 0x162   :  { %v388_v35 = vpop.permute.xlu1 %387  ;;  %1473 = vmatmul.mubr.msk.f32.vlgmr.msra.gmra.mrb[6].mxu0 %vm156_vm2, %v232_v31  ;;  %v312_v36 = vpop.permute.xlu0 %311 }
 0x163   :  { %1476 = vmatpush3.xpose.msk.msra.mxu0 %vm156_vm2, %v312_v36  ;;  %1483 = vmatmul.mubr.msk.f32.vlgmr.msra.gmra.mrb[0].mxu1 %vm156_vm2, %v388_v35 }
 0x164   :  { %1477 = vmatprep.mubr.msk.f32.mxu0 %vm1680_vm1, %v1679_v7  ;;  %1487 = vmatprep.mubr.msk.f32.mxu1 %vm1680_vm1, %v1679_v7 }
 0x165   :  { %1490 = vmatprep.subr.mxu0 %v1679_v7 }
 0x166   :  { %v310_v37 = vpop.permute.xlu0 %309  ;;  %v467_v38 = vpop.permute.xlu1 %466 }
 0x167   :  { %1478 = vmatmul.mubr.msk.f32.vlgmr.msra.gmra.mrb[8].mxu0 %vm156_vm2, %v310_v37  ;;  %1486 = vmatpush3.xpose.msk.msra.mxu1 %vm156_vm2, %v467_v38 }
 0x168   :  { %1492 = vmatprep.mubr.msk.f32.mxu0 %vm1680_vm1, %v1679_v7  ;;  %1495 = vmatprep.subr.mxu1 %v1679_v7 }
 0x16a   :  { %v545_v39 = vpop.permute.xlu0 %544  ;;  %1488 = vmatmul.mubr.msk.f32.vlgmr.msra.gmra.mrb[2].mxu1 %vm156_vm2, %v148_v29  ;;  %v543_v40 = vpop.permute.xlu1 %542 }
 0x16b   :  { %1491 = vmatpush3.xpose.msk.msra.mxu0 %vm156_vm2, %v545_v39  ;;  %1497 = vmatprep.mubr.msk.f32.mxu1 %vm1680_vm1, %v1679_v7 }
 0x16c   :  { %1500 = vmatprep.subr.mxu0 %v1679_v7 }
 0x16e   :  { %v623_v41 = vpop.permute.xlu0 %622  ;;  %1493 = vmatmul.mubr.msk.f32.vlgmr.msra.gmra.mrb[10].mxu0 %vm156_vm2, %v543_v40  ;;  %v701_v42 = vpop.permute.xlu1 %700 }
 0x16f   :  { %1496 = vmatpush3.xpose.msk.msra.mxu1 %vm156_vm2, %v623_v41  ;;  %1501 = vmatpush3.xpose.msk.msra.mxu0 %vm156_vm2, %v701_v42 }
 0x170   :  { %1505 = vmatprep.subr.mxu1 %v1783_v28  ;;  %1513 = vmatprep.subr.mxu0 %v150_v30 }
 0x171   :  { %1502 = vmatprep.mubr.msk.f32.mxu0 %vm1680_vm1, %v1679_v7 }
 0x172   :  { %v621_v43 = vpop.permute.xlu0 %620  ;;  %v699_v44 = vpop.permute.xlu1 %698 }
 0x173   :  { %1498 = vmatmul.mubr.msk.f32.vlgmr.msra.gmra.mrb[4].mxu1 %vm156_vm2, %v621_v43  ;;  %1503 = vmatmul.mubr.msk.f32.vlgmr.msra.gmra.mrb[12].mxu0 %vm156_vm2, %v699_v44 }
 0x174   :  { %1506 = vmatpush3.msra.mxu1 %v1783_v28  ;;  %1514 = vmatpush3.msra.mxu0 %v150_v30 }
 0x231   :  { %v227_v46 = vpop.f32.mrb[4].mxu0 }
 0x232   :  { %v784_v47 = vadd.f32 %v776_v45, %v227_v46  ;;  %v1469_v48 = vpop.f32.mrb[5].mxu0 }
 0x234   :  { %v793_v50 = vsel %vm792_vm3, %v784_v47, -inf }
 0x235   :  { %794 = vmax.xlane.f32.xlu0 %v793_v50  ;;  %v305_v51 = vpop.f32.mrb[6].mxu0 }
 0x236   :  { %v785_v53 = vadd.f32 %v777_v49, %v305_v51  ;;  %v1474_v54 = vpop.f32.mrb[7].mxu0  ;;  %v461_v55 = vpop.f32.mrb[0].mxu1 }
 0x237   :  { %v1484_v56 = vpop.f32.mrb[1].mxu1  ;;  %v787_v57 = vadd.f32 %v779_v52, %v461_v55 }
 0x238   :  { %v796_v58 = vsel %vm792_vm3, %v785_v53, -inf }
 0x239   :  { %797 = vmax.xlane.f32.xlu1 %v796_v58  ;;  %v802_v62 = vsel %vm792_vm3, %v787_v57, -inf }
 0x23a   :  { %v383_v59 = vpop.f32.mrb[8].mxu0 }
 0x23b   :  { %v1479_v60 = vpop.f32.mrb[9].mxu0  ;;  %v786_v3 = vadd.f32 %v778_v63, %v383_v59 }
 0x23d   :  { %v538_v0 = vpop.f32.mrb[2].mxu1  ;;  %803 = vmax.xlane.f32.xlu1 %v802_v62  ;;  %v799_v9 = vsel %vm792_vm3, %v786_v3, -inf }
 0x23e   :  { %v788_v1 = vadd.f32 %v780_v61, %v538_v0  ;;  %v1489_v2 = vpop.f32.mrb[3].mxu1 }
 0x240   :  { %v805_v4 = vsel %vm792_vm3, %v788_v1, -inf }
 0x241   :  { %806 = vmax.xlane.f32.xlu0 %v805_v4  ;;  %v616_v5 = vpop.f32.mrb[10].mxu0 }
 0x242   :  { %v1494_v7 = vpop.f32.mrb[11].mxu0  ;;  %v789_v8 = vadd.f32 %v781_v6, %v616_v5 }
 0x244   :  { %v808_v18 = vsel %vm792_vm3, %v789_v8, -inf }
 0x245   :  { %800 = vmax.xlane.f32.xlu0 %v799_v9 }
 0x246   :  { %v694_v12 = vpop.f32.mrb[4].mxu1  ;;  %v772_v13 = vpop.f32.mrb[12].mxu0 }
 0x247   :  { %v790_v14 = vadd.f32 %v782_v10, %v694_v12  ;;  %v1499_v15 = vpop.f32.mrb[5].mxu1  ;;  %v1504_v16 = vpop.f32.mrb[13].mxu0  ;;  %v791_v17 = vadd.f32 %v783_v11, %v772_v13 }
 0x249   :  { %809 = vmax.xlane.f32.xlu0 %v808_v18  ;;  %v811_v19 = vsel %vm792_vm3, %v790_v14, -inf  ;;  %v814_v20 = vsel %vm792_vm3, %v791_v17, -inf }
 0x24a   :  { %812 = vmax.xlane.f32.xlu1 %v811_v19 }
 0x24d   :  { %815 = vmax.xlane.f32.xlu0 %v814_v20 }
 0x2c2   :  { %v795_v21 = vpop.xlane.xlu0 %794 }
 0x2c3   :  { %v817_v22 = vsub.f32 %v784_v47, %v795_v21 }
 0x2c5   :  { %v825_v23 = vmul.f32 1.442695, %v817_v22 }
 0x2c6   :  { %v798_v24 = vpop.xlane.xlu1 %797 }
 0x2c7   :  { %1615 = vpow2.f32 %v825_v23  ;;  %v818_v27 = vsub.f32 %v785_v53, %v798_v24 }
 0x2c9   :  { %v827_v28 = vmul.f32 1.442695, %v818_v27 }
 0x2ca   :  { %v804_v29 = vpop.xlane.xlu1 %803 }
 0x2cb   :  { %1617 = vpow2.f32 %v827_v28  ;;  %v820_v30 = vsub.f32 %v787_v57, %v804_v29 }
 0x2cd   :  { %v831_v31 = vmul.f32 1.442695, %v820_v30 }
 0x2ce   :  { %v807_v32 = vpop.xlane.xlu0 %806 }
 0x2cf   :  { %1619 = vpow2.f32 %v831_v31  ;;  %v821_v33 = vsub.f32 %v788_v1, %v807_v32 }
 0x2d1   :  { %v1616_v34 = vpop.eup %1615  ;;  %v833_v35 = vmul.f32 1.442695, %v821_v33 }
 0x2d2   :  { %v801_v36 = vpop.xlane.xlu0 %800  ;;  %v841_v37 = vsel %vm792_vm3, %v1616_v34, 0.0 }
 0x2d3   :  { %1621 = vpow2.f32 %v833_v35  ;;  %v819_v38 = vsub.f32 %v786_v3, %v801_v36  ;;  %842 = vadd.xlane.f32.xlu1 %v841_v37 }
 0x2d5   :  { %v1618_v39 = vpop.eup %1617  ;;  %v829_v40 = vmul.f32 1.442695, %v819_v38 }
 0x2d6   :  { %v810_v41 = vpop.xlane.xlu0 %809  ;;  %v844_v42 = vsel %vm792_vm3, %v1618_v39, 0.0 }
 0x2d7   :  { %1623 = vpow2.f32 %v829_v40  ;;  %v822_v43 = vsub.f32 %v789_v8, %v810_v41  ;;  %v813_v44 = vpop.xlane.xlu1 %812  ;;  %845 = vadd.xlane.f32.xlu0 %v844_v42 }
 0x2d8   :  { %v823_v45 = vsub.f32 %v790_v14, %v813_v44 }
 0x2d9   :  { %v1620_v46 = vpop.eup %1619  ;;  %v835_v47 = vmul.f32 1.442695, %v822_v43 }
 0x2da   :  { %v837_v48 = vmul.f32 1.442695, %v823_v45  ;;  %v816_v49 = vpop.xlane.xlu0 %815  ;;  %v850_v50 = vsel %vm792_vm3, %v1620_v46, 0.0 }
 0x2db   :  { %1625 = vpow2.f32 %v835_v47  ;;  %v824_v51 = vsub.f32 %v791_v17, %v816_v49  ;;  %851 = vadd.xlane.f32.xlu1 %v850_v50 }
 0x2dc   :  { %1627 = vpow2.f32 %v837_v48 }
 0x2dd   :  { %v1622_v52 = vpop.eup %1621  ;;  %v839_v53 = vmul.f32 1.442695, %v824_v51 }
 0x2de   :  { %v853_v54 = vsel %vm792_vm3, %v1622_v52, 0.0 }
 0x2df   :  { %1629 = vpow2.f32 %v839_v53  ;;  %854 = vadd.xlane.f32.xlu0 %v853_v54  ;;  %v31_v53 = vld [vmem:[%s2040_s2 + $0x80] sm:$0xff] }
 0x2e0   :  { %v33_v54 = vld [vmem:[%s2040_s2 + $0xa0] sm:$0xff] }
 0x2e1   :  { %v1624_v55 = vpop.eup %1623 }
 0x2e2   :  { %v847_v56 = vsel %vm792_vm3, %v1624_v55, 0.0 }
 0x2e3   :  { %848 = vadd.xlane.f32.xlu1 %v847_v56  ;;  %v34_v56 = vld [vmem:[%s2040_s2 + $0xb0] sm:$0xff] }
 0x2e5   :  { %v1626_v57 = vpop.eup %1625 }
 0x2e6   :  { %v1628_v58 = vpop.eup %1627  ;;  %v856_v59 = vsel %vm792_vm3, %v1626_v57, 0.0 }
 0x2e7   :  { %857 = vadd.xlane.f32.xlu0 %v856_v59  ;;  %v859_v60 = vsel %vm792_vm3, %v1628_v58, 0.0  ;;  %v36_v59 = vld [vmem:[%s2040_s2 + $0xd0] sm:$0xff] }
 0x2e8   :  { %860 = vadd.xlane.f32.xlu1 %v859_v60 }
 0x2e9   :  { %v1630_v61 = vpop.eup %1629 }
 0x2ea   :  { %v862_v62 = vsel %vm792_vm3, %v1630_v61, 0.0 }
 0x2eb   :  { %863 = vadd.xlane.f32.xlu0 %v862_v62  ;;  %v38_v62 = vld [vmem:[%s2040_s2 + $0xf0] sm:$0xff] }
 0x360   :  { %v843_v63 = vpop.xlane.xlu1 %842 }
 0x361   :  { %1631 = vrcp.f32 %v843_v63 }
 0x364   :  { %v846_v0 = vpop.xlane.xlu0 %845 }
 0x365   :  { %1633 = vrcp.f32 %v846_v0  ;;  %v39_v0 = vld [vmem:[%s2040_s2 + $0x100] sm:$0xff] }
 0x368   :  { %v852_v2 = vpop.xlane.xlu1 %851 }
 0x36b   :  { %v1632_v1 = vpop.eup %1631 }
 0x36c   :  { %v855_v3 = vpop.xlane.xlu0 %854  ;;  %v873_v4 = vmul.f32 %v1632_v1, %v1616_v34  ;;  %v40_v1 = vld [vmem:[%s2040_s2 + $0x110] sm:$0xff] }
 0x36d   :  { %1635 = vrcp.f32 %v855_v3 }
 0x36e   :  { %1507 = vmatprep.mubr.msk.f32.mxu1 %vm792_vm3, %v873_v4  ;;  %1637 = vrcp.f32 %v852_v2  ;;  %v1569_v2 = vpack.c.bf16 %v40_v1, %v39_v0 }
 0x36f   :  { %v1634_v5 = vpop.eup %1633 }
 0x370   :  { %v874_v6 = vmul.f32 %v1634_v5, %v1618_v39  ;;  %v849_v7 = vpop.xlane.xlu1 %848 }
 0x371   :  { %1639 = vrcp.f32 %v849_v7 }
 0x372   :  { %1508 = vmatmul.mubr.msk.f32.vlgmr.msra.gmra.mrb[6].mxu1 %vm792_vm3, %v874_v6 }
 0x374   :  { %v858_v8 = vpop.xlane.xlu0 %857 }
 0x375   :  { %1641 = vrcp.f32 %v858_v8  ;;  %v861_v9 = vpop.xlane.xlu1 %860 }
 0x376   :  { %1643 = vrcp.f32 %v861_v9 }
 0x377   :  { %v1636_v10 = vpop.eup %1635 }
 0x378   :  { %v864_v11 = vpop.xlane.xlu0 %863  ;;  %v877_v12 = vmul.f32 %v1636_v10, %v1622_v52  ;;  %v1638_v13 = vpop.eup %1637 }
 0x379   :  { %1645 = vrcp.f32 %v864_v11  ;;  %v876_v16 = vmul.f32 %v1638_v13, %v1620_v46 }
 0x37a   :  { %1515 = vmatprep.mubr.msk.f32.mxu0 %vm792_vm3, %v877_v12 }
 0x37b   :  { %v1640_v14 = vpop.eup %1639 }
 0x37c   :  { %v875_v15 = vmul.f32 %v1640_v14, %v1624_v55  ;;  %v1688_v55 = vmov 0.0|0.0  }
 0x37d   :  { %1556 = vmatprep.subr.bf16.mxu1 %v1688_v55 }
 0x37e   :  { %1510 = vmatprep.mubr.msk.f32.mxu1 %vm792_vm3, %v875_v15 }
 0x37f   :  { %v1642_v17 = vpop.eup %1641  ;;  %1511 = vmatmul.mubr.msk.f32.gmra.mrb[8].mxu1 %vm792_vm3, %v876_v16 }
 0x380   :  { %v1644_v18 = vpop.eup %1643  ;;  %v878_v19 = vmul.f32 %v1642_v17, %v1626_v57  ;;  %v1560_v57 = vpack.c.bf16 %v34_v56, %v33_v54 }
 0x381   :  { %v879_v20 = vmul.f32 %v1644_v18, %v1628_v58  ;;  %v35_v58 = vld [vmem:[%s2040_s2 + $0xc0] sm:$0xff] }
 0x382   :  { %1516 = vmatmul.mubr.msk.f32.vlgmr.msra.gmra.mrb[14].mxu0 %vm792_vm3, %v878_v19  ;;  %v1563_v60 = vpack.c.bf16 %v36_v59, %v35_v58  ;;  %v41_v19 = vld [vmem:[%s2040_s2 + $0x120] sm:$0xff] }
 0x383   :  { %v1646_v21 = vpop.eup %1645  ;;  %1518 = vmatprep.mubr.msk.f32.mxu0 %vm792_vm3, %v879_v20  ;;  %v42_v20 = vld [vmem:[%s2040_s2 + $0x130] sm:$0xff] }
 0x384   :  { %v880_v22 = vmul.f32 %v1646_v21, %v1630_v61  ;;  %v37_v61 = vld [vmem:[%s2040_s2 + $0xe0] sm:$0xff]  ;;  %v1572_v21 = vpack.c.bf16 %v42_v20, %v41_v19 }
 0x385   :  { %v1566_v63 = vpack.c.bf16 %v38_v62, %v37_v61 }
 0x386   :  { %1519 = vmatmul.mubr.msk.f32.gmra.mrb[16].mxu0 %vm792_vm3, %v880_v22  ;;  %v43_v22 = vld [vmem:[%s2040_s2 + $0x140] sm:$0xff] }
 0x445   :  { %v1509_v23 = vpop.f32.mrb[6].mxu1 }
 0x446   :  { %979 = vrot.lane.b32.xlu1 %v1509_v23, %s1686_s25  ;;  %v959_v24 = vpop.f32.mrb[7].mxu1  ;;  %v44_v23 = vld [vmem:[%s2040_s2 + $0x150] sm:$0xff] }
 0x452   :  { %v1512_v27 = vpop.f32.mrb[8].mxu1 }
 0x453   :  { %987 = vrot.lane.b32.xlu1 %v1512_v27, %s1687_s26  ;;  %v969_v28 = vpop.f32.mrb[9].mxu1  ;;  %v45_v27 = vld [vmem:[%s2040_s2 + $0x160] sm:$0xff] }
 0x454   :  { %983 = vrot.lane.b32.xlu0 %v969_v28, %s1682_s22  ;;  %v46_v28 = vld [vmem:[%s2040_s2 + $0x170] sm:$0xff] }
 0x455   :  { %v1517_v29 = vpop.f32.mrb[14].mxu0 }
 0x456   :  { %v1073_v30 = vpop.f32.mrb[15].mxu0 }
 0x457   :  { %1093 = vrot.lane.b32.xlu1 %v1517_v29, %s1686_s25  ;;  %v1578_v29 = vpack.c.bf16 %v46_v28, %v45_v27 }
 0x459   :  { %v1520_v31 = vpop.f32.mrb[16].mxu0 }
 0x45a   :  { %v1083_v32 = vpop.f32.mrb[17].mxu0 }
 0x45b   :  { %1101 = vrot.lane.b32.xlu1 %v1520_v31, %s1687_s26  ;;  %1097 = vrot.lane.b32.xlu0 %v1083_v32, %s1682_s22  ;;  %v48_v31 = vld [vmem:[%s2040_s2 + $0x190] sm:$0xff] }
 0x4b8   :  { %v980_v33 = vpop.permute.xlu1 %979 }
 0x4b9   :  { %v991_v35 = vsel %vm990_vm4, %v959_v24, %v980_v33  ;;  %v1575_v24 = vpack.c.bf16 %v44_v23, %v43_v22  ;;  %v49_v33 = vld [vmem:[%s2040_s2 + $0x1a0] sm:$0xff] }
 0x4c5   :  { %v988_v34 = vpop.permute.xlu1 %987 }
 0x4c6   :  { %v984_v36 = vpop.permute.xlu0 %983 }
 0x4c7   :  { %v992_v37 = vsel %vm69_vm0, %v991_v35, %v984_v36  ;;  %v51_v36 = vld [vmem:[%s2040_s2 + $0x1c0] sm:$0xff] }
 0x4c8   :  { %v994_v38 = vsel %vm993_vm5, %v992_v37, %v988_v34  ;;  %v50_v34 = vld [vmem:[%s2040_s2 + $0x1b0] sm:$0xff] }
 0x4c9   :  { %v1094_v39 = vpop.permute.xlu1 %1093  ;;  %1109 = vrot.lane.b32.xlu0 %v994_v38, %s1686_s25  ;;  %v1584_v35 = vpack.c.bf16 %v50_v34, %v49_v33  ;;  %v52_v37 = vld [vmem:[%s2040_s2 + $0x1d0] sm:$0xff] }
 0x4ca   :  { %v1104_v40 = vsel %vm990_vm4, %v1073_v30, %v1094_v39  ;;  %v47_v30 = vld [vmem:[%s2040_s2 + $0x180] sm:$0xff]  ;;  %v1586_v38 = vpack.c.bf16 %v52_v37, %v51_v36 }
 0x4cb   :  { %v1581_v32 = vpack.c.bf16 %v48_v31, %v47_v30 }
 0x4cc   :  { %1587 = vmatprep.subr.bf16.mxu0 %v1586_v38 }
 0x4cd   :  { %v1102_v41 = vpop.permute.xlu1 %1101  ;;  %v1098_v42 = vpop.permute.xlu0 %1097  ;;  %1589 = vmatpush3.bf16.msra.mxu0 %v1586_v38 }
 0x4ce   :  { %v1105_v43 = vsel %vm69_vm0, %v1104_v40, %v1098_v42 }
 0x4cf   :  { %v1106_v44 = vsel %vm993_vm5, %v1105_v43, %v1102_v41  ;;  %v1155_v41 = vlaneseq }
 0x4d0   :  { %1111 = vrot.lane.b32.xlu1 %v1106_v44, %s1686_s25  ;;  %s1386_s25 = sshll.u32 %s1689_s24, 4  ;;  %s1387_s25 = int_to_ptr.vmem [resolvable:$true] %s1386_s25 }
 0x4d1   :  { %v1156_v43 = vshrl.u32 %v1155_v41, 7  ;;  %s1655_s26 = scalar_lea.vmem %s1387_s25, 256  ;;  %p1660_p1 = scmp.lt.s32.totalorder %s1387_s25, %s1387_s25 }
 0x4d2   :  { %p1656_p0 = scmp.ne.s32.totalorder %s1387_s25, %s1655_s26  ;;  %p1661_p2 = scmp.lt.s32.totalorder %s1655_s26, %s1655_s26 }
 0x4d4   :  { %p1662_p3 = por %p1661_p2, %p1660_p1 }
 0x4d6   :  { %p1663_p4 = pnand %p1662_p3, %p1656_p0 }
 0x53b   :  { %v1110_v45 = vpop.permute.xlu0 %1109 }
 0x53c   :  { %v1115_v46 = vsel %vm990_vm4, %v1765_v25, %v1110_v45  ;;  %v1117_v47 = vsel %vm990_vm4, %v1110_v45, 0.0  ;;  %v32_v25 = vld [vmem:[%s2040_s2 + $0x90] sm:$0xff] }
 0x53d   :  { %v1118_v48 = vadd.f32 %v1117_v47, %v1115_v46  ;;  %v1157_v47 = vsub.s32 0, %v1156_v43 }
 0x53f   :  { %1119 = vadd.xlane.f32.xlu0 %v1118_v48  ;;  %v1161_v48 = vsub.s32 1, %v1156_v43 }
 0x542   :  { %v1112_v49 = vpop.permute.xlu1 %1111 }
 0x543   :  { %v1116_v50 = vsel %vm990_vm4, %v1774_v26, %v1112_v49  ;;  %v1121_v51 = vsel %vm990_vm4, %v1112_v49, 0.0  ;;  %v1557_v26 = vpack.c.bf16 %v32_v25, %v31_v53 }
 0x544   :  { %v1122_v52 = vadd.f32 %v1121_v51, %v1116_v50 }
 0x545   :  { %1558 = vmatpush1.bf16.msra.mxu1 %v1557_v26 }
 0x546   :  { %1123 = vadd.xlane.f32.xlu1 %v1122_v52  ;;  %1559 = vmatprep.subr.bf16.mxu1 %v1688_v55 }
 0x549   :  { %1561 = vmatpush1.bf16.msra.mxu1 %v1560_v57 }
 0x54a   :  { %1562 = vmatprep.subr.bf16.mxu1 %v1688_v55 }
 0x54d   :  { %1564 = vmatpush1.bf16.msra.mxu1 %v1563_v60 }
 0x54e   :  { %1565 = vmatprep.subr.bf16.mxu1 %v1688_v55 }
 0x551   :  { %1567 = vmatpush1.bf16.msra.mxu1 %v1566_v63 }
 0x552   :  { %1568 = vmatprep.subr.bf16.mxu1 %v1688_v55 }
 0x555   :  { %1570 = vmatpush1.bf16.msra.mxu1 %v1569_v2 }
 0x556   :  { %1571 = vmatprep.subr.bf16.mxu1 %v1688_v55 }
 0x559   :  { %1573 = vmatpush1.bf16.msra.mxu1 %v1572_v21  ;;  %v64_v21 = vld [vmem:[%s2040_s2 + $0x243] ss:$0 sm:$0xff] }
 0x55a   :  { %1574 = vmatprep.subr.bf16.mxu1 %v1688_v55 }
 0x55d   :  { %1576 = vmatpush1.bf16.msra.mxu1 %v1575_v24 }
 0x55e   :  { %1577 = vmatprep.subr.bf16.mxu1 %v1688_v55 }
 0x561   :  { %1579 = vmatpush1.bf16.msra.mxu1 %v1578_v29 }
 0x562   :  { %1580 = vmatprep.subr.bf16.mxu1 %v1688_v55 }
 0x565   :  { %1582 = vmatpush1.bf16.msra.mxu1 %v1581_v32 }
 0x566   :  { %1583 = vmatprep.subr.bf16.mxu1 %v1688_v55 }
 0x569   :  { %1585 = vmatpush1.bf16.msra.mxu1 %v1584_v35 }
 0x5cc   :  { %v1120_v3 = vpop.xlane.xlu0 %1119 }
 0x5cd   :  { %v1126_v4 = vmul.f32 0.00625, %v1120_v3  ;;  %v53_v3 = vld [vmem:[%s2040_s2 + $0x1e0] sm:$0xff] }
 0x5cf   :  { %v1128_v5 = vsub.f32 %v1115_v46, %v1126_v4  ;;  %v1129_v6 = vsub.f32 %v1110_v45, %v1126_v4  ;;  %v54_v4 = vld [vmem:[%s2040_s2 + $0x1f0] sm:$0xff] }
 0x5d1   :  { %v1132_v7 = vmul.f32 %v1128_v5, %v1128_v5  ;;  %v1133_v8 = vmul.f32 %v1129_v6, %v1129_v6 }
 0x5d3   :  { %v1124_v9 = vpop.xlane.xlu1 %1123  ;;  %v1136_v10 = vsel %vm990_vm4, %v1133_v8, 0.0 }
 0x5d4   :  { %v1127_v11 = vmul.f32 0.00625, %v1124_v9  ;;  %v1137_v12 = vadd.f32 %v1136_v10, %v1132_v7  ;;  %v56_v7 = vld [vmem:[%s2040_s2 + $0x210] sm:$0xff]  ;;  %v57_v9 = vld [vmem:[%s2040_s2 + $0x220] sm:$0xff] }
 0x5d5   :  { %v58_v10 = vld [vmem:[%s2040_s2 + $0x230] sm:$0xff] }
 0x5d6   :  { %v1929_v13 = vsub.f32 %v1116_v50, %v1127_v11  ;;  %v1931_v14 = vsub.f32 %v1112_v49, %v1127_v11  ;;  %1138 = vadd.xlane.f32.xlu0 %v1137_v12  ;;  %v1397_v49 = vld [vmem:[%s2040_s2 + $0x240] ss:$8 sm:$0x3]  ;;  %v1398_v50 = vld [vmem:[%s2040_s2 + $0x241] ss:$8 sm:$0x3]  ;;  %v1598_v11 = vpack.c.bf16 %v58_v10, %v57_v9 }
 0x5d7   :  { %v1158_v51 = vrot.slane %v1397_v49, %v1157_v47  ;;  %v1162_v52 = vrot.slane %v1397_v49, %v1161_v48  ;;  %v1173_v55 = vrot.slane %v1398_v50, %v1157_v47  ;;  %v1177_v26 = vrot.slane %v1398_v50, %v1161_v48  ;;  %v63_v12 = vld [vmem:[%s2040_s2 + $0x242] ss:$0 sm:$0xff]  ;;  %v65_v47 = vld [vmem:[%s2040_s2 + $0x244] ss:$0 sm:$0xff] }
 0x5d8   :  { %v1134_v15 = vmul.f32 %v1929_v13, %v1929_v13  ;;  %v1135_v16 = vmul.f32 %v1931_v14, %v1931_v14 }
 0x5da   :  { %v1140_v17 = vsel %vm990_vm4, %v1135_v16, 0.0 }
 0x5db   :  { %v1141_v18 = vadd.f32 %v1140_v17, %v1134_v15 }
 0x5dd   :  { %1142 = vadd.xlane.f32.xlu0 %v1141_v18 }
 0x663   :  { %v1139_v39 = vpop.xlane.xlu0 %1138 }
 0x664   :  { %v1144_v40 = vmul.f32 0.00625, %v1139_v39 }
 0x666   :  { %v1146_v42 = vadd.f32 1e-05, %v1144_v40 }
 0x668   :  { %1647 = vrsqrt.f32 %v1146_v42 }
 0x66a   :  { %v1143_v44 = vpop.xlane.xlu0 %1142 }
 0x66b   :  { %v1145_v45 = vmul.f32 0.00625, %v1143_v44 }
 0x66d   :  { %v1147_v46 = vadd.f32 1e-05, %v1145_v45 }
 0x66f   :  { %1649 = vrsqrt.f32 %v1147_v46 }
 0x672   :  { %v1648_v53 = vpop.eup %1647 }
 0x673   :  { %v1150_v25 = vmul.f32 %v1648_v53, %v1128_v5  ;;  %v1151_v54 = vmul.f32 %v1648_v53, %v1129_v6  ;;  %v1590_v5 = vpack.c.bf16 %v54_v4, %v53_v3  ;;  %v55_v6 = vld [vmem:[%s2040_s2 + $0x200] sm:$0xff] }
 0x674   :  { %v1594_v8 = vpack.c.bf16 %v56_v7, %v55_v6 }
 0x675   :  { %v1166_v56 = vmul.f32 %v1162_v52, %v1151_v54  ;;  %v1165_v57 = vmul.f32 %v1158_v51, %v1150_v25  ;;  %1591 = vmatprep.subr.bf16.mxu0 %v1590_v5 }
 0x676   :  { %1593 = vmatpush3.bf16.msra.mxu0 %v1590_v5 }
 0x677   :  { %v1181_v58 = vadd.f32 %v1177_v26, %v1166_v56  ;;  %v1180_v59 = vadd.f32 %v1173_v55, %v1165_v57  ;;  %1595 = vmatprep.subr.bf16.mxu0 %v1594_v8 }
 0x679   :  { %v1650_v60 = vpop.eup %1649  ;;  %1425 = vmatprep.mubr.msk.f32.mxu1 %vm990_vm4, %v1181_v58 }
 0x67a   :  { %1255 = vmatmul.mubr.f32.vlgmr.msra.gmra.mrb[10].mxu1 %v1180_v59  ;;  %v1153_v61 = vmul.f32 %v1650_v60, %v1931_v14  ;;  %v1152_v62 = vmul.f32 %v1650_v60, %v1929_v13  ;;  %1597 = vmatpush3.bf16.msra.mxu0 %v1594_v8 }
 0x67b   :  { %1599 = vmatprep.subr.bf16.mxu0 %v1598_v11 }
 0x67c   :  { %v1168_v63 = vmul.f32 %v1162_v52, %v1153_v61  ;;  %v1167_v0 = vmul.f32 %v1158_v51, %v1152_v62  ;;  %v66_v51 = vld [vmem:[%s2040_s2 + $0x245] ss:$0 sm:$0xff] }
 0x67e   :  { %v1183_v1 = vadd.f32 %v1177_v26, %v1168_v63  ;;  %v1182_v2 = vadd.f32 %v1173_v55, %v1167_v0  ;;  %1601 = vmatpush3.bf16.msra.mxu0 %v1598_v11 }
 0x680   :  { %1426 = vmatprep.mubr.msk.f32.mxu1 %vm990_vm4, %v1183_v1 }
 0x681   :  { %1260 = vmatmul.mubr.f32.gmra.mrb[12].mxu1 %v1182_v2 }
 0x74d   :  { %v1256_v13 = vpop.f32.mrb[10].mxu1 }
 0x74e   :  { %v1257_v14 = vadd.f32 %v1256_v13, %v63_v12  ;;  %v1258_v15 = vpop.f32.mrb[11].mxu1 }
 0x750   :  { %v1265_v16 = vmax.f32 %v1257_v14, 0.0 }
 0x752   :  { %1537 = vmatprep.mubr.msk.f32.mxu0 %vm69_vm0, %v1265_v16 }
 0x754   :  { %v1261_v17 = vpop.f32.mrb[12].mxu1 }
 0x755   :  { %v1262_v18 = vadd.f32 %v1261_v17, %v63_v12  ;;  %v1263_v19 = vpop.f32.mrb[13].mxu1 }
 0x757   :  { %v1266_v20 = vmax.f32 %v1262_v18, 0.0 }
 0x759   :  { %1538 = vmatmul.mubr.msk.f32.vlgmr.msra.gmra.mrb[18].mxu0 %vm69_vm0, %v1266_v20 }
 0x82c   :  { %v1539_v22 = vpop.f32.mrb[18].mxu0 }
 0x82d   :  { %v1345_v23 = vadd.f32 %v1539_v22, %v64_v21  ;;  %v1339_v24 = vpop.f32.mrb[19].mxu0 }
 0x82e   :  { %v1340_v27 = vadd.f32 %v1339_v24, %v64_v21 }
 0x82f   :  { %v1351_v28 = vsel %vm990_vm4, %v1345_v23, 0.0 }
 0x830   :  { %1352 = vadd.xlane.f32.xlu0 %v1351_v28  ;;  %v1348_v29 = vsel %vm990_vm4, %v1340_v27, 0.0 }
 0x831   :  { %1349 = vadd.xlane.f32.xlu1 %v1348_v29 }
 0x8bd   :  { %v1353_v30 = vpop.xlane.xlu0 %1352 }
 0x8be   :  { %v1356_v31 = vmul.f32 0.03125, %v1353_v30  ;;  %v1350_v32 = vpop.xlane.xlu1 %1349 }
 0x8bf   :  { %v1355_v33 = vmul.f32 0.03125, %v1350_v32 }
 0x8c0   :  { %v1358_v34 = vsub.f32 %v1345_v23, %v1356_v31 }
 0x8c1   :  { %v1357_v35 = vsub.f32 %v1340_v27, %v1355_v33 }
 0x8c2   :  { %v1360_v36 = vmul.f32 %v1358_v34, %v1358_v34 }
 0x8c3   :  { %v1359_v37 = vmul.f32 %v1357_v35, %v1357_v35 }
 0x8c4   :  { %v1364_v38 = vsel %vm990_vm4, %v1360_v36, 0.0 }
 0x8c5   :  { %1365 = vadd.xlane.f32.xlu0 %v1364_v38  ;;  %v1361_v39 = vsel %vm990_vm4, %v1359_v37, 0.0 }
 0x8c6   :  { %1362 = vadd.xlane.f32.xlu1 %v1361_v39 }
 0x952   :  { %v1366_v40 = vpop.xlane.xlu0 %1365 }
 0x953   :  { %v1368_v41 = vmul.f32 0.03125, %v1366_v40  ;;  %v1363_v42 = vpop.xlane.xlu1 %1362 }
 0x954   :  { %v1367_v43 = vmul.f32 0.03125, %v1363_v42 }
 0x955   :  { %v1370_v44 = vadd.f32 1e-05, %v1368_v41 }
 0x956   :  { %v1369_v45 = vadd.f32 1e-05, %v1367_v43 }
 0x957   :  { %1651 = vrsqrt.f32 %v1370_v44 }
 0x958   :  { %1653 = vrsqrt.f32 %v1369_v45 }
 0x961   :  { %v1652_v46 = vpop.eup %1651 }
 0x962   :  { %v1654_v48 = vpop.eup %1653  ;;  %v1374_v49 = vmul.f32 %v1652_v46, %v1358_v34 }
 0x963   :  { %v1373_v50 = vmul.f32 %v1654_v48, %v1357_v35 }
 0x964   :  { %v1376_v52 = vmul.f32 %v1374_v49, %v65_v47 }
 0x965   :  { %v1375_v53 = vmul.f32 %v1373_v50, %v65_v47 }
 0x966   :  { %v1378_v25 = vadd.f32 %v1376_v52, %v66_v51 }
 0x967   :  { %v1377_v54 = vadd.f32 %v1375_v53, %v66_v51 }
 0x968   :  { %1380 = vst.msk [vmem:[#allocation2 + $0x8] sm:$0xff] %vm990_vm4, %v1378_v25 }
 0x969   :  { %1379 = vst.msk [vmem:[#allocation2] sm:$0xff] %vm990_vm4, %v1377_v54 }
 0x96a   :  { %1666 = shalt.err (!%p1663_p4)
}
 0x96b   :  { %s1667_s28 = scalar_lea.hbm %s2041_s3, 256 }
 0x96c   :  { %p1668_p5 = scmp.ne.s32.totalorder %s2041_s3, %s1667_s28  ;;  %p1671_p6 = scmp.lt.u32.totalorder %s1667_s28, %s2041_s3 }
 0x96e   :  { %p1673_p7 = pnand %p1671_p6, %p1668_p5 }
 0x970   :  { %1676 = shalt.err (!%p1673_p7)
}
 0x971   :  { %s1690_s6 = smov 128   ;;  %s1691_s7 = smov 8  }
 0x972   :  { %1392 = dma.vmem_to_hbm [thread:$0]  %s1387_s25, 256, %s2041_s3, [#allocation3], %s1690_s6, %s1690_s6, %s1691_s7  }
 0x973   :  { %1677 = dma.done.wait [#allocation3], 256  }
 0x974   :  { %1678 = vsyncadd [#allocation3], 4294967040 }
 0x975   :  { %1396 = vsyncpa [#allocation3], 1 }

</bundles_post_ra>
